<compile_context>
chip_gen: v6e
topology: v6e:2x2x1
jax: 0.10.0
libtpu: 0.0.40
codegen_flags: <defaults>
</compile_context>

<pallas_src>
import math

import numpy as np
import jax
import jax.numpy as jnp
from jax.experimental import pallas as pl
from jax.experimental.pallas import tpu as pltpu


def _round_up(x, m):
    return ((x + m - 1) // m) * m


def _cdiv(a, b):
    return (a + b - 1) // b


def _sin_time_embed_kernel(t_ref, m_ref, phase_ref, o_ref):
    # t_ref:     (TB, K_pad) f32   -- K_pad packed timesteps per output row (zero padded)
    # m_ref:     (K_pad, W)  f32   -- constant: per-lane frequency scatter/scale matrix
    # phase_ref: (1, W)      f32   -- constant: 0 on sin lanes, pi/2 on cos lanes
    # o_ref:     (TB, W)           -- W is a multiple of 128 -> lane-dense unmasked store
    args = jnp.dot(t_ref[...], m_ref[...], preferred_element_type=jnp.float32)
    args = args + phase_ref[...]                      # broadcast (1, W) -> (TB, W)
    o_ref[...] = jnp.sin(args).astype(o_ref.dtype)    # cos(x) == sin(x + pi/2)


def _reference(t, dim):
    half_dim = dim // 2
    emb = math.log(10000.0) / (half_dim - 1)
    emb = jnp.exp(jnp.arange(half_dim, dtype=jnp.float32) * -emb)
    emb = t[:, None] * emb[None, :]
    return jnp.concatenate([jnp.sin(emb), jnp.cos(emb)], axis=-1)


def sinusoidal_time_embedding(t, dim, *, out_dtype=jnp.float32,
                              rows_per_tile=None, force_pallas=False):
    """t: (B,) float timesteps -> (B, dim) embedding = cat(sin(t*f), cos(t*f), -1)."""
    assert dim % 2 == 0 and dim >= 4, "dim must be even and >= 4 (half_dim - 1 > 0)"
    half = dim // 2

    t = jnp.asarray(t, jnp.float32).reshape(-1)
    B = t.shape[0]

    # Tiny-input fast path: a pallas_call launch is pure overhead here.
    if not force_pallas and B * dim * 4 < (1 << 20):
        return _reference(t, dim).astype(out_dtype)

    # ---------- trace-time constants (numpy, hoisted out of the kernel) ----------
    scale = math.log(10000.0) / (half - 1)
    freqs = np.exp(-np.arange(half, dtype=np.float64) * scale).astype(np.float32)

    k = 128 // math.gcd(dim, 128)   # batch rows packed per output row
    W = k * dim                     # packed output width, always a multiple of 128
    K_pad = _round_up(k, 8)         # pad MXU contraction dim to a full sublane group

    freqs_row = np.concatenate([freqs, freqs])                       # (dim,)
    phase_row = np.concatenate([np.zeros(half, dtype=np.float32),
                                np.full(half, np.pi / 2, dtype=np.float32)])
    m_const = np.zeros((K_pad, W), dtype=np.float32)
    for j in range(k):
        m_const[j, j * dim:(j + 1) * dim] = freqs_row
    phase_const = np.tile(phase_row, k).reshape(1, W).astype(np.float32)

    # ---------- dim-adaptive tiling (output tile ~1 MiB, hard cap 4 MiB) ----------
    out_bytes = np.dtype(out_dtype).itemsize
    rows_total = _cdiv(B, k)
    if rows_per_tile is None:
        rows_per_tile = max(8, ((1 << 20) // (W * out_bytes)) // 8 * 8)
    vmem_cap_rows = max(8, ((4 << 20) // (W * out_bytes)) // 8 * 8)
    tb_max = min(max(8, _round_up(rows_per_tile, 8)), vmem_cap_rows)
    n_tiles = _cdiv(rows_total, tb_max)
    tb = _round_up(_cdiv(rows_total, n_tiles), 8)     # even split -> bounded pad waste
    rows_pad = n_tiles * tb
    b_pad = rows_pad * k

    tp = t if b_pad == B else jnp.pad(t, (0, b_pad - B))
    tp = tp.reshape(rows_pad, k)
    if K_pad != k:
        tp = jnp.pad(tp, ((0, 0), (0, K_pad - k)))

    cost = pl.CostEstimate(
        flops=2 * rows_pad * K_pad * W + rows_pad * W,
        transcendentals=rows_pad * W,
        bytes_accessed=rows_pad * (K_pad * 4 + W * out_bytes) + (K_pad + 1) * W * 4,
    )

    out = pl.pallas_call(
        _sin_time_embed_kernel,
        out_shape=jax.ShapeDtypeStruct((rows_pad, W), out_dtype),
        grid_spec=pltpu.PrefetchScalarGridSpec(
            num_scalar_prefetch=0,
            grid=(n_tiles,),
            in_specs=[
                pl.BlockSpec((tb, K_pad), lambda i: (i, 0)),   # packed timesteps
                pl.BlockSpec((K_pad, W), lambda i: (0, 0)),    # constant freq matrix
                pl.BlockSpec((1, W), lambda i: (0, 0)),        # constant phase row
            ],
            out_specs=pl.BlockSpec((tb, W), lambda i: (i, 0)),
        ),
        compiler_params=pltpu.CompilerParams(
            # batch axis is embarrassingly parallel (also shards across TCs)
            dimension_semantics=("parallel",),
        ),
        cost_estimate=cost,
    )(tp, jnp.asarray(m_const), jnp.asarray(phase_const))

    # (rows_pad, k*dim) -> (b_pad, dim): free row-major layout plumbing.
    out = out.reshape(b_pad, dim)
    return out if b_pad == B else out[:B]


if __name__ == "__main__":
    key = jax.random.PRNGKey(0)
    dim = 32

    # Small shape matching the module's typical use (flow-matching timesteps in [0, 1)).
    B_small = 8
    t_small = jax.random.uniform(key, (B_small,), dtype=jnp.float32)
    out_small = sinusoidal_time_embedding(t_small, dim, force_pallas=True)
    out_small = jax.block_until_ready(out_small)
    ref_small = _reference(t_small, dim)
    assert out_small.shape == (B_small, dim)
    assert jnp.allclose(out_small, ref_small, atol=1e-5, rtol=1e-5)

    # Larger batch exercising multiple grid tiles + remainder padding + packing.
    B_big = 300
    t_big = jax.random.uniform(jax.random.PRNGKey(1), (B_big,), dtype=jnp.float32)
    out_big = sinusoidal_time_embedding(t_big, dim, rows_per_tile=16, force_pallas=True)
    out_big = jax.block_until_ready(out_big)
    ref_big = _reference(t_big, dim)
    assert out_big.shape == (B_big, dim)
    assert jnp.allclose(out_big, ref_big, atol=1e-5, rtol=1e-5)

    print("KERNEL_OK")
</pallas_src>

<mosaic_0001>
module attributes {stable_mosaic.version = 11 : i64} {
  func.func @_sin_time_embed_kernel(%arg0: i32, %arg1: memref<8x8xf32, #tpu.memory_space<vmem>>, %arg2: memref<8x128xf32, #tpu.memory_space<vmem>>, %arg3: memref<1x128xf32, #tpu.memory_space<vmem>>, %arg4: memref<8x128xf32, #tpu.memory_space<vmem>>) attributes {dimension_semantics = [#tpu.dimension_semantics<parallel>], iteration_bounds = array<i64: 1>, scalar_prefetch = 0 : i64, scratch_operands = 0 : i64, tpu.core_type = #tpu.core_type<tc>, window_params = [{transform_indices = @transform_0, window_bounds = array<i64: 8, 8>}, {pipeline_mode = #tpu.pipeline_mode<synchronous>, transform_indices = @transform_1, window_bounds = array<i64: 8, 128>}, {pipeline_mode = #tpu.pipeline_mode<synchronous>, transform_indices = @transform_2, window_bounds = array<i64: 1, 128>}, {transform_indices = @transform_3, window_bounds = array<i64: 8, 128>}]} {
    %c0 = arith.constant 0 : index
    %c0_0 = arith.constant 0 : index
    %0 = vector.load %arg1[%c0, %c0_0] : memref<8x8xf32, #tpu.memory_space<vmem>>, vector<8x8xf32>
    %c0_1 = arith.constant 0 : index
    %c0_2 = arith.constant 0 : index
    %1 = vector.load %arg2[%c0_1, %c0_2] : memref<8x128xf32, #tpu.memory_space<vmem>>, vector<8x128xf32>
    %cst = arith.constant dense<0.000000e+00> : vector<8x128xf32>
    %2 = tpu.matmul %0, %1, %cst {dimension_numbers = #tpu.dot_dimension_numbers<[1], [0], [0], [1], [0, 0, 1, 1], [], []>} : vector<8x8xf32>, vector<8x128xf32>, vector<8x128xf32> -> vector<8x128xf32>
    %c0_3 = arith.constant 0 : index
    %c0_4 = arith.constant 0 : index
    %3 = vector.load %arg3[%c0_3, %c0_4] : memref<1x128xf32, #tpu.memory_space<vmem>>, vector<1x128xf32>
    %4 = vector.broadcast %3 : vector<1x128xf32> to vector<8x128xf32>
    %5 = arith.addf %2, %4 : vector<8x128xf32>
    %6 = math.sin %5 : vector<8x128xf32>
    %c0_5 = arith.constant 0 : index
    %c0_6 = arith.constant 0 : index
    %7 = vector.load %arg4[%c0_5, %c0_6] : memref<8x128xf32, #tpu.memory_space<vmem>>, vector<8x128xf32>
    tpu.vector_store %arg4[%c0_5, %c0_6], %6 {strides = array<i32>} : memref<8x128xf32, #tpu.memory_space<vmem>>, vector<8x128xf32>,
    return
  }
  func.func @transform_0(%arg0: i32) -> (i32, i32) {
    %c0_i32 = arith.constant 0 : i32
    %c0_i32_0 = arith.constant 0 : i32
    return %arg0, %c0_i32 : i32, i32
  }
  func.func @transform_1(%arg0: i32) -> (i32, i32) {
    %c0_i32 = arith.constant 0 : i32
    %c0_i32_0 = arith.constant 0 : i32
    %c0_i32_1 = arith.constant 0 : i32
    return %c0_i32, %c0_i32_0 : i32, i32
  }
  func.func @transform_2(%arg0: i32) -> (i32, i32) {
    %c0_i32 = arith.constant 0 : i32
    %c0_i32_0 = arith.constant 0 : i32
    %c0_i32_1 = arith.constant 0 : i32
    return %c0_i32, %c0_i32_0 : i32, i32
  }
  func.func @transform_3(%arg0: i32) -> (i32, i32) {
    %c0_i32 = arith.constant 0 : i32
    %c0_i32_0 = arith.constant 0 : i32
    return %arg0, %c0_i32 : i32, i32
  }
}

</mosaic_0001>

<bundles_post_ra>
// kernel: tpu_custom_call.1
= control target key start
LH: loop header
LB: loop body
LE: loop exit
PB: predicated region body
PF: predicated region fallthrough
CT: control target
= control target key end

     0   :  { %8 = vsyncpa [#allocation3], 0  ;;  %s405_s0 = inlined_call_operand.hbm [shape: f32[8,8], index: 0, kind: input, shape index: {}]   ;;  %s406_s1 = inlined_call_operand.hbm [shape: f32[8,128], index: 1, kind: input, shape index: {}]   ;;  %s407_s2 = inlined_call_operand.vmem [shape: f32[1,128], index: 2, kind: input, shape index: {}]   ;;  %s408_s3 = inlined_call_operand.hbm [shape: f32[8,128], index: 3, kind: output, shape index: {}]  }
   0x1   :  { %9 = vsyncpa [#allocation6], 0 }
   0x2   :  { %10 = vsyncpa [#allocation4], 0  ;;  %s341_s12 = smov [#allocation2]   ;;  %s342_s14 = smov [#allocation5]  }
   0x3   :  { %s17_s13 = sshll.u32 %s341_s12, 4  ;;  %s27_s15 = sshll.u32 %s342_s14, 4  ;;  %s18_s13 = int_to_ptr.vmem [resolvable:$true] %s17_s13  ;;  %s28_s15 = int_to_ptr.vmem [resolvable:$true] %s27_s15 }
   0x4   :  { %s283_s16 = scalar_lea.vmem %s18_s13, 128  ;;  %p288_p1 = scmp.lt.s32.totalorder %s18_s13, %s18_s13 }
   0x5   :  { %p284_p0 = scmp.ne.s32.totalorder %s18_s13, %s283_s16  ;;  %p289_p2 = scmp.lt.s32.totalorder %s283_s16, %s283_s16 }
   0x7   :  { %p290_p3 = por %p289_p2, %p288_p1 }
   0x9   :  { %p291_p4 = pnand %p290_p3, %p284_p0 }
   0xb   :  { %294 = shalt.err (!%p291_p4)
}
   0xc   :  { %20 = dma.hbm_to_vmem [thread:$0]  %s405_s0, 128, %s18_s13, [#allocation3]  }
   0xd   :  { %s303_s19 = scalar_lea.vmem %s28_s15, 128  ;;  %p308_p6 = scmp.lt.s32.totalorder %s28_s15, %s28_s15 }
   0xe   :  { %p304_p5 = scmp.ne.s32.totalorder %s28_s15, %s303_s19  ;;  %p309_p7 = scmp.lt.s32.totalorder %s303_s19, %s303_s19 }
  0x10   :  { %p310_p8 = por %p309_p7, %p308_p6 }
  0x12   :  { %p311_p9 = pnand %p310_p8, %p304_p5 }
  0x14   :  { %314 = shalt.err (!%p311_p9)
}
  0x15   :  { %30 = dma.hbm_to_vmem [thread:$0]  %s406_s1, 128, %s28_s15, [#allocation6]  }
  0x16   :  { %335 = dma.done.wait [#allocation3], 128  }
  0x17   :  { %336 = vsyncadd [#allocation3], 4294967168 }
  0x18   :  { %337 = dma.done.wait [#allocation6], 128  }
  0x19   :  { %338 = vsyncadd [#allocation6], 4294967168  ;;  %v343_v0 = vmov 0.0   ;;  %vm344_vm0 = vmmov 0   ;;  %vm48_vm1 = vcmask 64512   ;;  %v40_v1 = vld [vmem:[#allocation5] sm:$0xff] }
  0x1a   :  { %251 = vmatprep.subr.mxu0 %v343_v0  ;;  %253 = vmatprep.mubr.msk.f32.mxu0 %vm344_vm0, %v343_v0  ;;  %v39_v2 = vld [vmem:[#allocation2] sm:$0xff]  ;;  %v345_v17 = vmov 683565275   ;;  %v346_v19 = vmov 2475754826   ;;  %s351_s1 = smov [#allocation7]  }
  0x1b   :  { %252 = vmatpush3.msra.mxu0 %v40_v1  ;;  %v243_v3 = vld [vmem:[%s407_s2] ss:$0 sm:$0xff]  ;;  %v347_v22 = vmov 2131351028   ;;  %v348_v25 = vmov 2102212464  }
  0x1c   :  { %254 = vmatmul.mubr.msk.f32.vlgmr.msra.gmra.mxu0 %vm48_vm1, %v39_v2  ;;  %v349_v28 = vmov 920167782   ;;  %v350_v31 = vmov 1326507024   ;;  %s233_s2 = sshll.u32 %s351_s1, 4  ;;  %s234_s2 = int_to_ptr.vmem [resolvable:$true] %s233_s2 }
  0x1d   :  { %s315_s23 = scalar_lea.vmem %s234_s2, 128  ;;  %p320_p11 = scmp.lt.s32.totalorder %s234_s2, %s234_s2 }
  0x1e   :  { %p316_p10 = scmp.ne.s32.totalorder %s234_s2, %s315_s23  ;;  %p321_p12 = scmp.lt.s32.totalorder %s315_s23, %s315_s23 }
  0x20   :  { %p322_p13 = por %p321_p12, %p320_p11 }
  0x22   :  { %p323_p0 = pnand %p322_p13, %p316_p10 }
  0xdc   :  { %v118_v4 = vpop.f32.mrf.mxu0 }
  0xdd   :  { %v381_v5 = vadd.f32 %v243_v3, %v118_v4 }
  0xde   :  { %v255_v6 = vpop.f32.mrf.mxu0 }
  0xdf   :  { %v125_v7 = vand.u32 2139095040, %v381_v5  ;;  %v122_v11 = vand.u32 2147483647, %v381_v5  ;;  %vm124_vm9 = vcmp.lt.s32.totalorder %v381_v5, 0  ;;  %vm214_vm14 = vweird.f32 %v381_v5 }
  0xe1   :  { %v126_v8 = vshrl.u32 %v125_v7, 23  ;;  %v129_v14 = vand.u32 8388607, %v122_v11  ;;  %vm123_vm10 = vcmp.le.f32.partialorder %v122_v11, 0.7853982 }
  0xe3   :  { %v245_v9 = vadd.s32 4294967169, %v126_v8  ;;  %v130_v33 = vor.u32 8388608, %v129_v14 }
  0xe5   :  { %v132_v10 = vadd.s32 1, %v245_v9  ;;  %v170_v47 = vshll.u32 %v130_v33, 8 }
  0xe7   :  { %vm133_vm2 = vcmp.gt.s32.totalorder %v132_v10, 0 }
  0xe8   :  { %v134_v12 = vsel %vm133_vm2, %v132_v10, 0 }
  0xe9   :  { %v136_v13 = vand.u32 31, %v134_v12  ;;  %v135_v16 = vshrl.u32 %v134_v12, 5 }
  0xeb   :  { %v137_v15 = vsub.s32 32, %v136_v13  ;;  %v139_v18 = vshll.u32 %v345_v17, %v136_v13  ;;  %v142_v20 = vshll.u32 %v346_v19, %v136_v13  ;;  %v145_v24 = vshll.u32 %v347_v22, %v136_v13 }
  0xec   :  { %v148_v27 = vshll.u32 %v348_v25, %v136_v13  ;;  %v151_v30 = vshll.u32 %v349_v28, %v136_v13  ;;  %vm154_vm3 = vcmp.lt.s32.totalorder %v135_v16, 1  ;;  %vm157_vm4 = vcmp.lt.s32.totalorder %v135_v16, 4 }
  0xed   :  { %v140_v21 = vshrl.u32 %v346_v19, %v137_v15  ;;  %v143_v23 = vshrl.u32 %v347_v22, %v137_v15  ;;  %v146_v26 = vshrl.u32 %v348_v25, %v137_v15  ;;  %v149_v29 = vshrl.u32 %v349_v28, %v137_v15 }
  0xee   :  { %v152_v32 = vshrl.u32 %v350_v31, %v137_v15  ;;  %v138_v42 = vshrl.u32 %v345_v17, %v137_v15  ;;  %vm156_vm5 = vcmp.lt.s32.totalorder %v135_v16, 3  ;;  %vm155_vm6 = vcmp.lt.s32.totalorder %v135_v16, 2 }
  0xef   :  { %v141_v34 = vor.u32 %v140_v21, %v139_v18  ;;  %v144_v35 = vor.u32 %v143_v23, %v142_v20  ;;  %v147_v36 = vor.u32 %v146_v26, %v145_v24  ;;  %v150_v37 = vor.u32 %v149_v29, %v148_v27 }
  0xf0   :  { %v153_v38 = vor.u32 %v152_v32, %v151_v30 }
  0xf1   :  { %v159_v39 = vsel %vm157_vm4, %v147_v36, 2102212464  ;;  %v162_v40 = vsel %vm154_vm3, %v141_v34, %v144_v35  ;;  %v166_v41 = vsel %vm154_vm3, %v144_v35, %v147_v36  ;;  %v163_v43 = vsel %vm157_vm4, %v150_v37, 920167782 }
  0xf2   :  { %v167_v44 = vsel %vm157_vm4, %v153_v38, 1326507024  ;;  %v164_v45 = vsel %vm156_vm5, %v147_v36, %v163_v43  ;;  %v158_v48 = vsel %vm154_vm3, %v138_v42, %v141_v34  ;;  %v160_v49 = vsel %vm156_vm5, %v144_v35, %v159_v39 }
  0xf3   :  { %v168_v46 = vsel %vm156_vm5, %v150_v37, %v167_v44  ;;  %v165_v50 = vsel %vm155_vm6, %v162_v40, %v164_v45  ;;  %v161_v56 = vsel %vm155_vm6, %v158_v48, %v160_v49 }
  0xf4   :  { %v169_v51 = vsel %vm155_vm6, %v166_v41, %v168_v46  ;;  %v390_v54 = vmul.u32.u64.low %v170_v47, %v165_v50  ;;  %v391_v55 = vmul.u32.u64.high %v170_v47, %v165_v50, %v390_v54  ;;  %v177_v58 = vmul.u32 %v170_v47, %v161_v56 }
  0xf5   :  { %v387_v52 = vmul.u32.u64.low %v170_v47, %v169_v51  ;;  %v388_v53 = vmul.u32.u64.high %v170_v47, %v169_v51, %v387_v52 }
  0xf6   :  { %v180_v57 = vadd.s32 1, %v391_v55 }
  0xf7   :  { %vm179_vm7 = vc.u32 %v388_v53, %v390_v54  ;;  %v178_v7 = vadd.s32 %v390_v54, %v388_v53 }
  0xf8   :  { %v181_v59 = vsel %vm179_vm7, %v180_v57, %v391_v55 }
  0xf9   :  { %v182_v60 = vadd.s32 %v181_v59, %v177_v58 }
  0xfb   :  { %v183_v61 = vadd.s32 536870912, %v182_v60 }
  0xfd   :  { %v184_v62 = vshrl.u32 %v183_v61, 30 }
  0xff   :  { %v185_v63 = vshll.u32 %v184_v62, 30  ;;  %v208_v21 = vsub.s32 4, %v184_v62 }
 0x101   :  { %v186_v0 = vsub.s32 %v182_v60, %v185_v63  ;;  %v209_v24 = vsel %vm124_vm9, %v208_v21, %v184_v62 }
 0x102   :  { %v211_v25 = vsel %vm123_vm10, 0, %v209_v24 }
 0x103   :  { %v188_v1 = vsub.s32 0, %v186_v0  ;;  %v215_v26 = vadd.s32 3, %v211_v25 }
 0x105   :  { %v246_v2 = vmin.u32 %v188_v1, %v186_v0  ;;  %v216_v27 = vand.u32 3, %v215_v26 }
 0x107   :  { %v190_v3 = vclz %v246_v2  ;;  %vm221_vm11 = vcmp.eq.s32.totalorder %v216_v27, 2  ;;  %vm218_vm12 = vcmp.eq.s32.totalorder %v216_v27, 0  ;;  %vm217_vm13 = vcmp.lt.s32.totalorder %v216_v27, 2 }
 0x109   :  { %v247_v4 = vadd.s32 4294967294, %v190_v3 }
 0x10b   :  { %vm248_vm8 = vcmp.lt.s32.totalorder %v247_v4, 0 }
 0x10c   :  { %v193_v6 = vsel %vm248_vm8, 0, %v247_v4 }
 0x10d   :  { %v194_v8 = vsub.s32 32, %v193_v6  ;;  %v198_v9 = vsub.s32 4294967266, %v193_v6  ;;  %v195_v10 = vshll.u32 %v186_v0, %v193_v6 }
 0x10f   :  { %v196_v12 = vshrl.u32 %v178_v7, %v194_v8  ;;  %v199_v13 = vadd.s32 127, %v198_v9 }
 0x111   :  { %v197_v14 = vor.u32 %v196_v12, %v195_v10  ;;  %v200_v15 = vshll.u32 %v199_v13, 23 }
 0x113   :  { %v201_v16 = vor.u32 4788187, %v200_v15  ;;  %v204_v18 = vcvt.s32.f32 %v197_v14 }
 0x115   :  { %v202_v17 = vand.u32 2147483647, %v201_v16 }
 0x117   :  { %v205_v19 = vmul.f32 %v204_v18, %v202_v17 }
 0x119   :  { %v206_v20 = vxor.u32 2147483648, %v205_v19 }
 0x11b   :  { %v207_v22 = vsel %vm124_vm9, %v206_v20, %v205_v19 }
 0x11c   :  { %v210_v23 = vsel %vm123_vm10, %v381_v5, %v207_v22 }
 0x11d   :  { %271 = vcosq.f32 %v210_v23 }
 0x11e   :  { %273 = vsinq.f32 %v210_v23 }
 0x12a   :  { %v272_v28 = vpop.eup %271 }
 0x12b   :  { %v274_v29 = vpop.eup %273  ;;  %v222_v30 = vxor.u32 2147483648, %v272_v28 }
 0x12c   :  { %v219_v31 = vxor.u32 2147483648, %v274_v29 }
 0x12d   :  { %v223_v32 = vsel %vm221_vm11, %v222_v30, %v274_v29 }
 0x12e   :  { %v220_v33 = vsel %vm218_vm12, %v272_v28, %v219_v31 }
 0x12f   :  { %v224_v11 = vsel %vm217_vm13, %v220_v33, %v223_v32 }
 0x130   :  { %v225_v34 = vsel %vm214_vm14, nan, %v224_v11 }
 0x131   :  { %226 = vst [vmem:[#allocation7] sm:$0xff] %v225_v34 }
 0x132   :  { %326 = shalt.err (!%p323_p0)
}
 0x133   :  { %236 = dma.vmem_to_hbm [thread:$0]  %s234_s2, 128, %s408_s3, [#allocation4]  }
 0x134   :  { %339 = dma.done.wait [#allocation4], 128  }
 0x135   :  { %340 = vsyncadd [#allocation4], 4294967168 }
 0x136   :  { %240 = vsyncpa [#allocation3], 1 }
 0x137   :  { %241 = vsyncpa [#allocation6], 1 }
 0x138   :  { %242 = vsyncpa [#allocation4], 1 }

</bundles_post_ra>
